<compile_context>
chip_gen: v6e
topology: v6e:2x2x1
jax: 0.10.0
libtpu: 0.0.40
codegen_flags: <defaults>
</compile_context>

<pallas_src>
import functools

import jax
import jax.numpy as jnp
from jax.experimental import pallas as pl
from jax.experimental.pallas import tpu as pltpu

_LANES = 128
_MAX_TILE_ROWS = 2048  # (2048, 128) f32 tile = 1 MiB per input per buffer


def _adv_loss_kernel(real_ref, fake_ref, out_ref, acc_ref, *,
                     tile_rows, valid_rows_last):
    c = pl.program_id(0)          # megacore-parallel partition
    j = pl.program_id(1)          # reduction (row-tile) axis

    @pl.when(j == 0)
    def _():
        acc_ref[...] = jnp.zeros_like(acc_ref)

    r = real_ref[...].astype(jnp.float32)
    f = fake_ref[...].astype(jnp.float32)

    # Numerically-stable softplus for both streams, fused:
    #   softplus(-r) + softplus(f)
    #     = relu(-r) + relu(f) + log1p(er) + log1p(ef)
    #     = relu(-r) + relu(f) + log1p(er + ef + er*ef)     (3 EUP ops, not 4)
    er = jnp.exp(-jnp.abs(r))
    ef = jnp.exp(-jnp.abs(f))
    sp = (jnp.maximum(-r, 0.0) + jnp.maximum(f, 0.0)
          + jnp.log1p(er + ef + er * ef))

    if valid_rows_last == tile_rows:
        # All tiles are full: pure VPU accumulate, no masking anywhere.
        acc_ref[...] += sp
    else:
        # Only the globally last tile is partial; everything else stays on the
        # cheap unmasked path.
        is_last = jnp.logical_and(c == pl.num_programs(0) - 1,
                                  j == pl.num_programs(1) - 1)

        @pl.when(jnp.logical_not(is_last))
        def _():
            acc_ref[...] += sp

        @pl.when(is_last)
        def _():
            row = jax.lax.broadcasted_iota(jnp.int32, (tile_rows, _LANES), 0)
            acc_ref[...] += jnp.where(row < valid_rows_last, sp, 0.0)

    @pl.when(j == pl.num_programs(1) - 1)
    def _():
        # One sublane (XLU) reduce per partition; lane-dense (1,128) store.
        out_ref[...] = jnp.sum(acc_ref[...], axis=0, keepdims=True)


def adversarial_loss(real_pred, fake_pred, *, max_tile_rows=_MAX_TILE_ROWS):
    """Pallas TPU implementation of AdversarialLoss.forward."""
    assert real_pred.shape == fake_pred.shape, "real/fake logits must match"
    n = int(real_pred.size)
    assert n > 0
    if max_tile_rows != _MAX_TILE_ROWS:
        assert max_tile_rows % 8 == 0, "tile rows must respect (8,128) tiling"

    # Flatten (free); keep native dtype — f32 cast happens in-kernel.
    r = real_pred.reshape(-1)
    f = fake_pred.reshape(-1)

    rows = n // _LANES            # 128-aligned prefix handled by the kernel
    n_main = rows * _LANES

    total = jnp.float32(0.0)

    if rows > 0:
        r2 = r[:n_main].reshape(rows, _LANES)
        f2 = f[:n_main].reshape(rows, _LANES)

        tile_rows = rows if rows <= max_tile_rows else max_tile_rows
        num_tiles = pl.cdiv(rows, tile_rows)

        # v7x megacore split: 2 partitions when the tile count divides evenly.
        # TODO(synk): handle odd tile counts by rebalancing rows per partition.
        num_parallel = 2 if (num_tiles >= 2 and num_tiles % 2 == 0) else 1
        tiles_per_part = num_tiles // num_parallel
        valid_rows_last = rows - (num_tiles - 1) * tile_rows

        def idx_map(c, j):
            return (c * tiles_per_part + j, 0)

        kernel = functools.partial(
            _adv_loss_kernel,
            tile_rows=tile_rows,
            valid_rows_last=valid_rows_last,
        )

        partials = pl.pallas_call(
            kernel,
            out_shape=jax.ShapeDtypeStruct((num_parallel, _LANES), jnp.float32),
            grid_spec=pltpu.PrefetchScalarGridSpec(
                num_scalar_prefetch=0,
                grid=(num_parallel, tiles_per_part),
                in_specs=[
                    pl.BlockSpec((tile_rows, _LANES), idx_map),
                    pl.BlockSpec((tile_rows, _LANES), idx_map),
                ],
                out_specs=pl.BlockSpec((1, _LANES), lambda c, j: (c, 0)),
                scratch_shapes=[pltpu.VMEM((tile_rows, _LANES), jnp.float32)],
            ),
            compiler_params=pltpu.CompilerParams(
                dimension_semantics=("parallel", "arbitrary"),
            ),
        )(r2, f2)
        total = total + jnp.sum(partials)

    if n_main < n:
        # <=127-element ragged tail: negligible, handled in plain JAX so the
        # kernel never needs lane padding or a wrapper-side concatenate copy.
        tr = r[n_main:].astype(jnp.float32)
        tf = f[n_main:].astype(jnp.float32)
        tail = (jnp.maximum(-tr, 0.0) + jnp.log1p(jnp.exp(-jnp.abs(tr)))
                + jnp.maximum(tf, 0.0) + jnp.log1p(jnp.exp(-jnp.abs(tf))))
        total = total + jnp.sum(tail)

    return total * jnp.float32(1.0 / (2.0 * n))


def _reference(real_pred, fake_pred):
    rp = real_pred.astype(jnp.float32)
    fp = fake_pred.astype(jnp.float32)
    real_loss = jnp.mean(jnp.maximum(-rp, 0.0) + jnp.log1p(jnp.exp(-jnp.abs(rp))))
    fake_loss = jnp.mean(jnp.maximum(fp, 0.0) + jnp.log1p(jnp.exp(-jnp.abs(fp))))
    return (real_loss + fake_loss) / 2.0


if __name__ == "__main__":
    key = jax.random.PRNGKey(0)

    # (shape, max_tile_rows override) — small shapes exercising every path:
    cases = [
        ((2, 4, 16, 16), None),  # 2048 elems: single full tile, no mask/tail
        ((2, 1, 30, 30), None),  # 900 elems: ragged tail handled in wrapper
        ((2, 1, 40, 48), 8),     # rows=30: 2-way parallel split + partial last tile
        ((2, 1, 24, 64), 8),     # rows=24: odd tile count -> single partition, multi-step
    ]

    for shape, mtr in cases:
        key, k1, k2 = jax.random.split(key, 3)
        real_pred = jax.random.normal(k1, shape, dtype=jnp.float32) * 2.0 + 0.5
        fake_pred = jax.random.normal(k2, shape, dtype=jnp.float32) * 2.0 - 0.5

        if mtr is None:
            loss = adversarial_loss(real_pred, fake_pred)
        else:
            loss = adversarial_loss(real_pred, fake_pred, max_tile_rows=mtr)
        loss = jax.block_until_ready(loss)

        ref = _reference(real_pred, fake_pred)
        assert jnp.allclose(loss, ref, rtol=1e-5, atol=1e-5), (shape, loss, ref)

    print("KERNEL_OK")
</pallas_src>

<mosaic_0001>
module attributes {stable_mosaic.version = 11 : i64} {
  func.func @_adv_loss_kernel(%arg0: i32, %arg1: i32, %arg2: memref<16x128xf32, #tpu.memory_space<vmem>>, %arg3: memref<16x128xf32, #tpu.memory_space<vmem>>, %arg4: memref<1x128xf32, #tpu.memory_space<vmem>>, %arg5: memref<16x128xf32, #tpu.memory_space<vmem>>) attributes {dimension_semantics = [#tpu.dimension_semantics<parallel>, #tpu.dimension_semantics<arbitrary>], iteration_bounds = array<i64: 1, 1>, scalar_prefetch = 0 : i64, scratch_operands = 1 : i64, tpu.core_type = #tpu.core_type<tc>, window_params = [{transform_indices = @transform_0, window_bounds = array<i64: 16, 128>}, {transform_indices = @transform_1, window_bounds = array<i64: 16, 128>}, {transform_indices = @transform_2, window_bounds = array<i64: 1, 128>}]} {
    %c0_i32 = arith.constant 0 : i32
    %0 = arith.cmpi eq, %arg1, %c0_i32 : i32
    %1 = arith.extui %0 : i1 to i32
    %c0_i32_0 = arith.constant 0 : i32
    %2 = arith.cmpi ne, %1, %c0_i32_0 : i32
    scf.if %2 {
      %cst_14 = arith.constant 0.000000e+00 : f32
      %31 = vector.broadcast %cst_14 : f32 to vector<16x128xf32>
      %c0_15 = arith.constant 0 : index
      %c0_16 = arith.constant 0 : index
      %32 = vector.load %arg5[%c0_15, %c0_16] : memref<16x128xf32, #tpu.memory_space<vmem>>, vector<16x128xf32>
      tpu.vector_store %arg5[%c0_15, %c0_16], %31 {strides = array<i32>} : memref<16x128xf32, #tpu.memory_space<vmem>>, vector<16x128xf32>,
    } else {
    }
    %c0 = arith.constant 0 : index
    %c0_1 = arith.constant 0 : index
    %3 = vector.load %arg2[%c0, %c0_1] : memref<16x128xf32, #tpu.memory_space<vmem>>, vector<16x128xf32>
    %c0_2 = arith.constant 0 : index
    %c0_3 = arith.constant 0 : index
    %4 = vector.load %arg3[%c0_2, %c0_3] : memref<16x128xf32, #tpu.memory_space<vmem>>, vector<16x128xf32>
    %5 = math.absf %3 : vector<16x128xf32>
    %cst = arith.constant 0.000000e+00 : f32
    %6 = vector.broadcast %cst : f32 to vector<16x128xf32>
    %7 = arith.subf %6, %5 : vector<16x128xf32>
    %8 = math.exp %7 : vector<16x128xf32>
    %9 = math.absf %4 : vector<16x128xf32>
    %cst_4 = arith.constant 0.000000e+00 : f32
    %10 = vector.broadcast %cst_4 : f32 to vector<16x128xf32>
    %11 = arith.subf %10, %9 : vector<16x128xf32>
    %12 = math.exp %11 : vector<16x128xf32>
    %cst_5 = arith.constant 0.000000e+00 : f32
    %13 = vector.broadcast %cst_5 : f32 to vector<16x128xf32>
    %14 = arith.subf %13, %3 : vector<16x128xf32>
    %cst_6 = arith.constant 0.000000e+00 : f32
    %15 = vector.broadcast %cst_6 : f32 to vector<16x128xf32>
    %16 = arith.maximumf %14, %15 : vector<16x128xf32>
    %cst_7 = arith.constant 0.000000e+00 : f32
    %17 = vector.broadcast %cst_7 : f32 to vector<16x128xf32>
    %18 = arith.maximumf %4, %17 : vector<16x128xf32>
    %19 = arith.addf %16, %18 : vector<16x128xf32>
    %20 = arith.addf %8, %12 : vector<16x128xf32>
    %21 = arith.mulf %8, %12 : vector<16x128xf32>
    %22 = arith.addf %20, %21 : vector<16x128xf32>
    %23 = math.log1p %22 : vector<16x128xf32>
    %24 = arith.addf %19, %23 : vector<16x128xf32>
    %c0_8 = arith.constant 0 : index
    %c0_9 = arith.constant 0 : index
    %25 = vector.load %arg5[%c0_8, %c0_9] : memref<16x128xf32, #tpu.memory_space<vmem>>, vector<16x128xf32>
    %26 = arith.addf %25, %24 : vector<16x128xf32>
    %c0_10 = arith.constant 0 : index
    %c0_11 = arith.constant 0 : index
    %27 = vector.load %arg5[%c0_10, %c0_11] : memref<16x128xf32, #tpu.memory_space<vmem>>, vector<16x128xf32>
    tpu.vector_store %arg5[%c0_10, %c0_11], %26 {strides = array<i32>} : memref<16x128xf32, #tpu.memory_space<vmem>>, vector<16x128xf32>,
    %c0_i32_12 = arith.constant 0 : i32
    %28 = arith.cmpi eq, %arg1, %c0_i32_12 : i32
    %29 = arith.extui %28 : i1 to i32
    %c0_i32_13 = arith.constant 0 : i32
    %30 = arith.cmpi ne, %29, %c0_i32_13 : i32
    scf.if %30 {
      %c0_14 = arith.constant 0 : index
      %c0_15 = arith.constant 0 : index
      %31 = vector.load %arg5[%c0_14, %c0_15] : memref<16x128xf32, #tpu.memory_space<vmem>>, vector<16x128xf32>
      %cst_16 = arith.constant dense<0.000000e+00> : vector<128xf32>
      %32 = vector.multi_reduction <add>, %31, %cst_16 [0] : vector<16x128xf32> to vector<128xf32>
      %33 = vector.shape_cast %32 : vector<128xf32> to vector<1x128xf32>
      %c0_17 = arith.constant 0 : index
      %c0_18 = arith.constant 0 : index
      %34 = vector.load %arg4[%c0_17, %c0_18] : memref<1x128xf32, #tpu.memory_space<vmem>>, vector<1x128xf32>
      tpu.vector_store %arg4[%c0_17, %c0_18], %33 {strides = array<i32>} : memref<1x128xf32, #tpu.memory_space<vmem>>, vector<1x128xf32>,
    } else {
    }
    return
  }
  func.func @transform_0(%arg0: i32, %arg1: i32) -> (i32, i32) {
    %c1_i32 = arith.constant 1 : i32
    %0 = arith.muli %arg0, %c1_i32 : i32
    %1 = arith.addi %0, %arg1 : i32
    %c0_i32 = arith.constant 0 : i32
    %c0_i32_0 = arith.constant 0 : i32
    return %1, %c0_i32 : i32, i32
  }
  func.func @transform_1(%arg0: i32, %arg1: i32) -> (i32, i32) {
    %c1_i32 = arith.constant 1 : i32
    %0 = arith.muli %arg0, %c1_i32 : i32
    %1 = arith.addi %0, %arg1 : i32
    %c0_i32 = arith.constant 0 : i32
    %c0_i32_0 = arith.constant 0 : i32
    return %1, %c0_i32 : i32, i32
  }
  func.func @transform_2(%arg0: i32, %arg1: i32) -> (i32, i32) {
    %c0_i32 = arith.constant 0 : i32
    %c0_i32_0 = arith.constant 0 : i32
    return %arg0, %c0_i32 : i32, i32
  }
}

</mosaic_0001>

<bundles_post_ra>
// kernel: tpu_custom_call.1
= control target key start
LH: loop header
LB: loop body
LE: loop exit
PB: predicated region body
PF: predicated region fallthrough
CT: control target
= control target key end

     0   :  { %7 = vsyncpa [#allocation4], 0  ;;  %s259_s0 = inlined_call_operand.hbm [shape: f32[16,128], index: 0, kind: input, shape index: {}]   ;;  %s260_s1 = inlined_call_operand.hbm [shape: f32[16,128], index: 1, kind: input, shape index: {}]   ;;  %s261_s2 = inlined_call_operand.hbm [shape: f32[1,128], index: 2, kind: output, shape index: {}]  }
   0x1   :  { %8 = vsyncpa [#allocation7], 0 }
   0x2   :  { %9 = vsyncpa [#allocation5], 0  ;;  %s230_s9 = smov [#allocation3]  }
   0x3   :  { %s19_s10 = sshll.u32 %s230_s9, 4  ;;  %s20_s10 = int_to_ptr.vmem [resolvable:$true] %s19_s10 }
   0x4   :  { %s172_s11 = scalar_lea.vmem %s20_s10, 256  ;;  %p177_p1 = scmp.lt.s32.totalorder %s20_s10, %s20_s10 }
   0x5   :  { %p173_p0 = scmp.ne.s32.totalorder %s20_s10, %s172_s11  ;;  %p178_p2 = scmp.lt.s32.totalorder %s172_s11, %s172_s11 }
   0x7   :  { %p179_p3 = por %p178_p2, %p177_p1 }
   0x9   :  { %p180_p4 = pnand %p179_p3, %p173_p0 }
   0xb   :  { %183 = shalt.err (!%p180_p4)
}
   0xc   :  { %s231_s12 = smov 128   ;;  %s232_s13 = smov 8  }
   0xd   :  { %25 = dma.hbm_to_vmem [thread:$0]  %s259_s0, 256, %s20_s10, [#allocation4], %s231_s12, %s231_s12, %s232_s13  }
   0xe   :  { %s233_s16 = smov [#allocation6]  }
   0xf   :  { %s35_s17 = sshll.u32 %s233_s16, 4  ;;  %s36_s17 = int_to_ptr.vmem [resolvable:$true] %s35_s17 }
  0x10   :  { %s192_s18 = scalar_lea.vmem %s36_s17, 256  ;;  %p197_p6 = scmp.lt.s32.totalorder %s36_s17, %s36_s17 }
  0x11   :  { %p193_p5 = scmp.ne.s32.totalorder %s36_s17, %s192_s18  ;;  %p198_p7 = scmp.lt.s32.totalorder %s192_s18, %s192_s18 }
  0x13   :  { %p199_p8 = por %p198_p7, %p197_p6 }
  0x15   :  { %p200_p9 = pnand %p199_p8, %p193_p5 }
  0x17   :  { %203 = shalt.err (!%p200_p9)
}
  0x18   :  { %41 = dma.hbm_to_vmem [thread:$0]  %s260_s1, 256, %s36_s17, [#allocation7], %s231_s12, %s231_s12, %s232_s13  }
  0x19   :  { %224 = dma.done.wait [#allocation4], 256  }
  0x1a   :  { %225 = vsyncadd [#allocation4], 4294967040 }
  0x1b   :  { %226 = dma.done.wait [#allocation7], 256  }
  0x1c   :  { %227 = vsyncadd [#allocation7], 4294967040  ;;  %v58_v0 = vld [vmem:[#allocation3] sm:$0xff]  ;;  %v59_v1 = vld [vmem:[#allocation3 + $0x8] sm:$0xff]  ;;  %s234_s0 = smov [#allocation8]  }
  0x1d   :  { %v60_v2 = vld [vmem:[#allocation6] sm:$0xff]  ;;  %v61_v3 = vld [vmem:[#allocation6 + $0x8] sm:$0xff]  ;;  %v62_v4 = vand.u32 2147483647, %v58_v0  ;;  %v63_v5 = vand.u32 2147483647, %v59_v1 }
  0x1e   :  { %v70_v6 = vand.u32 2147483647, %v60_v2  ;;  %v71_v7 = vand.u32 2147483647, %v61_v3  ;;  %v78_v29 = vsub.f32 0.0, %v58_v0  ;;  %v79_v31 = vsub.f32 0.0, %v59_v1 }
  0x1f   :  { %v64_v8 = vsub.f32 0.0, %v62_v4  ;;  %v65_v9 = vsub.f32 0.0, %v63_v5  ;;  %v82_v34 = vmax.f32 %v60_v2, 0.0  ;;  %v83_v38 = vmax.f32 %v61_v3, 0.0  ;;  %s137_s1 = sshll.u32 %s234_s0, 4  ;;  %s138_s1 = int_to_ptr.vmem [resolvable:$true] %s137_s1 }
  0x20   :  { %v72_v10 = vsub.f32 0.0, %v70_v6  ;;  %v73_v11 = vsub.f32 0.0, %v71_v7  ;;  %v80_v33 = vmax.f32 %v78_v29, 0.0  ;;  %v81_v37 = vmax.f32 %v79_v31, 0.0  ;;  %s204_s21 = scalar_lea.vmem %s138_s1, 16  ;;  %s208_s22 = scalar_lea.vmem %s138_s1, 32 }
  0x21   :  { %v66_v12 = vmul.f32 1.442695, %v64_v8  ;;  %v68_v13 = vmul.f32 1.442695, %v65_v9  ;;  %p205_p10 = scmp.ne.s32.totalorder %s138_s1, %s204_s21  ;;  %p209_p11 = scmp.lt.s32.totalorder %s138_s1, %s138_s1 }
  0x22   :  { %v74_v14 = vmul.f32 1.442695, %v72_v10  ;;  %v76_v15 = vmul.f32 1.442695, %v73_v11  ;;  %v84_v42 = vadd.f32 %v82_v34, %v80_v33  ;;  %v85_v45 = vadd.f32 %v83_v38, %v81_v37  ;;  %p210_p12 = scmp.lt.s32.totalorder %s208_s22, %s204_s21 }
  0x23   :  { %152 = vpow2.f32 %v66_v12 }
  0x24   :  { %154 = vpow2.f32 %v68_v13  ;;  %p211_p13 = por %p210_p12, %p209_p11 }
  0x25   :  { %156 = vpow2.f32 %v74_v14 }
  0x26   :  { %158 = vpow2.f32 %v76_v15  ;;  %p212_p0 = pnand %p211_p13, %p205_p10 }
  0x30   :  { %v153_v16 = vpop.eup %152 }
  0x31   :  { %v155_v17 = vpop.eup %154 }
  0x32   :  { %v157_v18 = vpop.eup %156 }
  0x33   :  { %v159_v19 = vpop.eup %158  ;;  %v86_v20 = vadd.f32 %v157_v18, %v153_v16  ;;  %v88_v21 = vmul.f32 %v157_v18, %v153_v16 }
  0x34   :  { %v87_v22 = vadd.f32 %v159_v19, %v155_v17  ;;  %v89_v23 = vmul.f32 %v159_v19, %v155_v17 }
  0x35   :  { %v90_v24 = vadd.f32 %v88_v21, %v86_v20 }
  0x36   :  { %v91_v25 = vadd.f32 %v89_v23, %v87_v22 }
  0x37   :  { %v92_v26 = vadd.f32 1.0, %v90_v24  ;;  %v95_v28 = vmul.f32 -0.5, %v90_v24  ;;  %v98_v35 = vand.u32 2147483647, %v90_v24 }
  0x38   :  { %v101_v27 = vadd.f32 1.0, %v91_v25  ;;  %v104_v30 = vmul.f32 -0.5, %v91_v25  ;;  %v107_v39 = vand.u32 2147483647, %v91_v25 }
  0x39   :  { %160 = vlog2.f32 %v92_v26  ;;  %v96_v32 = vadd.f32 1.0, %v95_v28  ;;  %vm99_vm0 = vcmp.lt.f32.partialorder %v98_v35, 0.0004427343 }
  0x3a   :  { %162 = vlog2.f32 %v101_v27  ;;  %v105_v36 = vadd.f32 1.0, %v104_v30  ;;  %vm108_vm1 = vcmp.lt.f32.partialorder %v107_v39, 0.0004427343 }
  0x3b   :  { %v97_v40 = vmul.f32 %v96_v32, %v90_v24 }
  0x3c   :  { %v106_v43 = vmul.f32 %v105_v36, %v91_v25 }
  0x46   :  { %v161_v41 = vpop.eup %160 }
  0x47   :  { %v163_v44 = vpop.eup %162  ;;  %v94_v46 = vmul.f32 0.6931472, %v161_v41 }
  0x48   :  { %v103_v47 = vmul.f32 0.6931472, %v163_v44 }
  0x49   :  { %v100_v48 = vsel %vm99_vm0, %v97_v40, %v94_v46 }
  0x4a   :  { %v109_v49 = vsel %vm108_vm1, %v106_v43, %v103_v47  ;;  %v110_v50 = vadd.f32 %v100_v48, %v84_v42 }
  0x4b   :  { %v111_v51 = vadd.f32 %v109_v49, %v85_v45 }
  0x4d   :  { %v123_v52 = vadd.f32 %v111_v51, %v110_v50 }
  0x4f   :  { %v124_v53 = vrot.slane %v123_v52, 4 }
  0x51   :  { %v125_v54 = vadd.f32 %v124_v53, %v123_v52 }
  0x53   :  { %v126_v55 = vrot.slane %v125_v54, 2 }
  0x55   :  { %v127_v56 = vadd.f32 %v126_v55, %v125_v54 }
  0x57   :  { %v128_v57 = vrot.slane %v127_v56, 1 }
  0x59   :  { %v129_v58 = vadd.f32 %v128_v57, %v127_v56 }
  0x5b   :  { %130 = vst [vmem:[#allocation8] sm:$0x1] %v129_v58 }
  0x5c   :  { %215 = shalt.err (!%p212_p0)
}
  0x5d   :  { %140 = dma.vmem_to_hbm [thread:$0]  %s138_s1, 16, %s261_s2, [#allocation5]  }
  0x5e   :  { %228 = dma.done.wait [#allocation5], 16  }
  0x5f   :  { %229 = vsyncadd [#allocation5], 4294967280 }
  0x60   :  { %144 = vsyncpa [#allocation4], 1 }
  0x61   :  { %145 = vsyncpa [#allocation7], 1 }
  0x62   :  { %146 = vsyncpa [#allocation5], 1 }

</bundles_post_ra>
